<compile_context>
chip_gen: v7x
topology: tpu7x:2x2x1
jax: 0.10.0
libtpu: 0.0.40
codegen_flags: <defaults>
</compile_context>

<pallas_src>
from functools import partial

import jax
import jax.numpy as jnp
from jax.experimental import pallas as pl
from jax.experimental.pallas import tpu as pltpu


def _linear_kernel(x_ref, w_ref, b_ref, o_ref, acc_ref, *, input_dim, tk, masked):
    # x_ref: (TB, TK) VMEM   w_ref: (TK, 1) VMEM   b_ref: (1, 1) SMEM
    # o_ref: (TB, 1)  VMEM   acc_ref: (TB, 1) f32 VMEM scratch
    k = pl.program_id(1)
    nk = pl.num_programs(1)

    @pl.when(k == 0)
    def _():
        acc_ref[...] = jnp.zeros_like(acc_ref)

    x = x_ref[...]
    if masked:
        # Last K block may read past input_dim: zero those lanes so they do not
        # contribute to the reduction (weight is zero-padded in lockstep).
        lane = jax.lax.broadcasted_iota(jnp.int32, x.shape, 1) + k * tk
        x = jnp.where(lane < input_dim, x, jnp.zeros_like(x))

    # MXU matmul (N=1): does the K-reduction inside the systolic array.
    acc_ref[...] += jnp.dot(x, w_ref[...], preferred_element_type=jnp.float32)

    @pl.when(k == nk - 1)
    def _():
        o_ref[...] = (acc_ref[...] + b_ref[0, 0]).astype(o_ref.dtype)


def _choose_tiles(batch, input_dim, *, tile_bytes_budget=8 * 1024 * 1024):
    """Pick (tb, tk, nb, nk): batch/feature tile sizes and grid extents."""
    bpe = 4  # f32

    # Prefer the whole feature dim in one K block (no padding, no masking).
    if input_dim * 128 * bpe <= tile_bytes_budget:
        tk = input_dim
        nk = 1
    else:
        # K-blocking for very large input_dim: lane-aligned K tiles.
        tk = max(128, (tile_bytes_budget // (128 * bpe)) // 128 * 128)
        nk = pl.cdiv(input_dim, tk)

    # Largest batch tile (multiple of 128) that keeps the x block under budget.
    tb = max(128, (tile_bytes_budget // (tk * bpe)) // 128 * 128)
    # Don't exceed the (128-rounded) batch.
    tb = min(tb, pl.cdiv(batch, 128) * 128)
    # Keep at least 2 batch tiles when there is enough work, so v7x's second
    # TensorCore gets fed (no effect on single-TC v5e/v6e).
    if batch >= 256:
        tb = min(tb, pl.cdiv(batch, 2 * 128) * 128)
    nb = pl.cdiv(batch, tb)
    return tb, tk, nb, nk


def poly_regression_forward(x, weight, bias):
    """Equivalent of torch.nn.Linear(input_dim, 1) forward.

    x:      (batch, input_dim) float32
    weight: (1, input_dim)     float32   (PyTorch layout: out_features x in_features)
    bias:   (1,)               float32
    returns (batch, 1) float32
    """
    batch, input_dim = x.shape
    tb, tk, nb, nk = _choose_tiles(batch, input_dim)

    masked = (nk > 1) and (input_dim % tk != 0)
    d_pad = nk * tk

    # Weight as a lane-trivial (D, 1) column; only this tiny array ever gets
    # padded (and only in the K-blocked case).
    w_col = weight.reshape(input_dim, 1).astype(x.dtype)
    if d_pad != input_dim:
        w_col = jnp.pad(w_col, ((0, d_pad - input_dim), (0, 0)))
    b_smem = bias.reshape(1, 1).astype(jnp.float32)

    x_tile_bytes = tb * tk * 4
    # Double-buffered x tiles + headroom for weight/output/scratch, capped for
    # v7x's 64 MiB per-TC VMEM.
    vmem_limit = int(min(64 * 1024 * 1024, 2 * x_tile_bytes + 8 * 1024 * 1024))

    kernel = partial(_linear_kernel, input_dim=input_dim, tk=tk, masked=masked)

    out = pl.pallas_call(
        kernel,
        out_shape=jax.ShapeDtypeStruct((batch, 1), x.dtype),
        grid_spec=pltpu.PrefetchScalarGridSpec(
            num_scalar_prefetch=0,
            grid=(nb, nk),
            in_specs=[
                # x: one (TB, TK) tile per step, double-buffered by Pallas.
                pl.BlockSpec((tb, tk), lambda i, k: (i, k)),
                # weight column: only depends on k (resident when nk == 1).
                pl.BlockSpec((tk, 1), lambda i, k: (k, 0)),
                # bias scalar in SMEM.
                pl.BlockSpec((1, 1), lambda i, k: (0, 0),
                             memory_space=pltpu.MemorySpace.SMEM),
            ],
            # Contiguous (TB, 1) output blocks; same block across the K axis.
            out_specs=pl.BlockSpec((tb, 1), lambda i, k: (i, 0)),
            scratch_shapes=[pltpu.VMEM((tb, 1), jnp.float32)],
        ),
        compiler_params=pltpu.CompilerParams(
            dimension_semantics=("parallel", "arbitrary"),
            vmem_limit_bytes=vmem_limit,
        ),
    )(x, w_col, b_smem)

    return out


if __name__ == "__main__":
    key = jax.random.PRNGKey(0)
    batch, input_dim = 8, 32

    kx, kw, kb = jax.random.split(key, 3)
    x = jax.random.normal(kx, (batch, input_dim), dtype=jnp.float32)
    # Deterministic init mirroring torch.nn.Linear's uniform(-1/sqrt(D), 1/sqrt(D))
    bound = 1.0 / jnp.sqrt(jnp.float32(input_dim))
    weight = jax.random.uniform(kw, (1, input_dim), minval=-bound, maxval=bound,
                                dtype=jnp.float32)
    bias = jax.random.uniform(kb, (1,), minval=-bound, maxval=bound, dtype=jnp.float32)

    out = poly_regression_forward(x, weight, bias)
    out = jax.block_until_ready(out)

    # Reference check in plain JAX (same math as torch Linear).
    ref = x @ weight.T + bias
    assert out.shape == (batch, 1)
    assert jnp.allclose(out, ref, atol=1e-5, rtol=1e-5)

    print("KERNEL_OK")
</pallas_src>

<mosaic_0001>
module attributes {stable_mosaic.version = 11 : i64} {
  func.func @_linear_kernel(%arg0: i32, %arg1: i32, %arg2: memref<128x32xf32, #tpu.memory_space<vmem>>, %arg3: memref<32x1xf32, #tpu.memory_space<vmem>>, %arg4: memref<1x1xf32, #tpu.memory_space<smem>>, %arg5: memref<128x1xf32, #tpu.memory_space<vmem>>, %arg6: memref<128x1xf32, #tpu.memory_space<vmem>>) attributes {dimension_semantics = [#tpu.dimension_semantics<parallel>, #tpu.dimension_semantics<arbitrary>], iteration_bounds = array<i64: 1, 1>, scalar_prefetch = 0 : i64, scratch_operands = 1 : i64, tpu.core_type = #tpu.core_type<tc>, window_params = [{transform_indices = @transform_0, window_bounds = array<i64: 128, 32>}, {transform_indices = @transform_1, window_bounds = array<i64: 32, 1>}, {transform_indices = @transform_2, window_bounds = array<i64: 1, 1>}, {transform_indices = @transform_3, window_bounds = array<i64: 128, 1>}]} {
    %c0_i32 = arith.constant 0 : i32
    %0 = arith.cmpi eq, %arg1, %c0_i32 : i32
    %1 = arith.extui %0 : i1 to i32
    %c0_i32_0 = arith.constant 0 : i32
    %2 = arith.cmpi ne, %1, %c0_i32_0 : i32
    scf.if %2 {
      %cst_10 = arith.constant 0.000000e+00 : f32
      %12 = vector.broadcast %cst_10 : f32 to vector<128x1xf32>
      %c0_11 = arith.constant 0 : index
      %c0_12 = arith.constant 0 : index
      %13 = vector.load %arg6[%c0_11, %c0_12] : memref<128x1xf32, #tpu.memory_space<vmem>>, vector<128x1xf32>
      tpu.vector_store %arg6[%c0_11, %c0_12], %12 {strides = array<i32>} : memref<128x1xf32, #tpu.memory_space<vmem>>, vector<128x1xf32>,
    } else {
    }
    %c0 = arith.constant 0 : index
    %c0_1 = arith.constant 0 : index
    %3 = vector.load %arg2[%c0, %c0_1] : memref<128x32xf32, #tpu.memory_space<vmem>>, vector<128x32xf32>
    %c0_2 = arith.constant 0 : index
    %c0_3 = arith.constant 0 : index
    %4 = vector.load %arg6[%c0_2, %c0_3] : memref<128x1xf32, #tpu.memory_space<vmem>>, vector<128x1xf32>
    %c0_4 = arith.constant 0 : index
    %c0_5 = arith.constant 0 : index
    %5 = vector.load %arg3[%c0_4, %c0_5] : memref<32x1xf32, #tpu.memory_space<vmem>>, vector<32x1xf32>
    %cst = arith.constant dense<0.000000e+00> : vector<128x1xf32>
    %6 = tpu.matmul %3, %5, %cst {dimension_numbers = #tpu.dot_dimension_numbers<[1], [0], [0], [1], [0, 0, 1, 1], [], []>} : vector<128x32xf32>, vector<32x1xf32>, vector<128x1xf32> -> vector<128x1xf32>
    %7 = arith.addf %4, %6 : vector<128x1xf32>
    %c0_6 = arith.constant 0 : index
    %c0_7 = arith.constant 0 : index
    %8 = vector.load %arg6[%c0_6, %c0_7] : memref<128x1xf32, #tpu.memory_space<vmem>>, vector<128x1xf32>
    tpu.vector_store %arg6[%c0_6, %c0_7], %7 {strides = array<i32>} : memref<128x1xf32, #tpu.memory_space<vmem>>, vector<128x1xf32>,
    %c0_i32_8 = arith.constant 0 : i32
    %9 = arith.cmpi eq, %arg1, %c0_i32_8 : i32
    %10 = arith.extui %9 : i1 to i32
    %c0_i32_9 = arith.constant 0 : i32
    %11 = arith.cmpi ne, %10, %c0_i32_9 : i32
    scf.if %11 {
      %c0_10 = arith.constant 0 : index
      %c0_11 = arith.constant 0 : index
      %12 = vector.load %arg6[%c0_10, %c0_11] : memref<128x1xf32, #tpu.memory_space<vmem>>, vector<128x1xf32>
      %c0_12 = arith.constant 0 : index
      %c0_13 = arith.constant 0 : index
      %13 = memref.load %arg4[%c0_12, %c0_13] : memref<1x1xf32, #tpu.memory_space<smem>>
      %14 = vector.broadcast %13 : f32 to vector<128x1xf32>
      %15 = arith.addf %12, %14 : vector<128x1xf32>
      %c0_14 = arith.constant 0 : index
      %c0_15 = arith.constant 0 : index
      %16 = vector.load %arg5[%c0_14, %c0_15] : memref<128x1xf32, #tpu.memory_space<vmem>>, vector<128x1xf32>
      tpu.vector_store %arg5[%c0_14, %c0_15], %15 {strides = array<i32>} : memref<128x1xf32, #tpu.memory_space<vmem>>, vector<128x1xf32>,
    } else {
    }
    return
  }
  func.func @transform_0(%arg0: i32, %arg1: i32) -> (i32, i32) {
    %c0_i32 = arith.constant 0 : i32
    return %arg0, %arg1 : i32, i32
  }
  func.func @transform_1(%arg0: i32, %arg1: i32) -> (i32, i32) {
    %c0_i32 = arith.constant 0 : i32
    %c0_i32_0 = arith.constant 0 : i32
    return %arg1, %c0_i32 : i32, i32
  }
  func.func @transform_2(%arg0: i32, %arg1: i32) -> (i32, i32) {
    %c0_i32 = arith.constant 0 : i32
    %c0_i32_0 = arith.constant 0 : i32
    %c0_i32_1 = arith.constant 0 : i32
    return %c0_i32, %c0_i32_0 : i32, i32
  }
  func.func @transform_3(%arg0: i32, %arg1: i32) -> (i32, i32) {
    %c0_i32 = arith.constant 0 : i32
    %c0_i32_0 = arith.constant 0 : i32
    return %arg0, %c0_i32 : i32, i32
  }
}

</mosaic_0001>

<bundles_post_ra>
// kernel: tpu_custom_call.1
= control target key start
LH: loop header
LB: loop body
LE: loop exit
PB: predicated region body
PF: predicated region fallthrough
CT: control target
= control target key end

     0   :  { %vm72_vm0 = vcmask 261120   ;;  %vm19_vm1 = vcmask 7168   ;;  %v473_v7 = vmov 0.0   ;;  %s609_s0 = inlined_call_operand.vmem [shape: f32[8,32], index: 0, kind: input, shape index: {}]   ;;  %s610_s1 = inlined_call_operand.vmem [shape: f32[32,1], index: 1, kind: input, shape index: {}]   ;;  %s611_s2 = inlined_call_operand.<no memory space> [shape: f32[1,1], index: 2, kind: input, shape index: {}]   ;;  %s612_s3 = inlined_call_operand.vmem [shape: f32[8,1], index: 3, kind: output, shape index: {}]  }
   0x1   :  { %v68_v0 = vld [vmem:[%s610_s1] sm:$0xff]  ;;  %v69_v1 = vld [vmem:[%s610_s1 + $0x8] sm:$0xff]  ;;  %v70_v2 = vld [vmem:[%s610_s1 + $0x10] sm:$0xff]  ;;  %21 = vst.msk [vmem:[#allocation2 + $0x8] sm:$0xff] %vm19_vm1, %v473_v7  ;;  %v319_v51 = vstv %s611_s2 }
   0x2   :  { %v460_v3 = vpack.c.bf16 %v69_v1, %v68_v0  ;;  %v71_v4 = vld [vmem:[%s610_s1 + $0x18] sm:$0xff]  ;;  %v36_v5 = vld [vmem:[%s609_s0] sm:$0xff]  ;;  %20 = vst.msk [vmem:[#allocation2] sm:$0xff] %vm19_vm1, %v473_v7  ;;  %22 = vst.msk [vmem:[#allocation2 + $0x10] sm:$0xff] %vm19_vm1, %v473_v7 }
   0x3   :  { %v44_v6 = vld [vmem:[%s609_s0 + $0x40] sm:$0xff]  ;;  %23 = vst.msk [vmem:[#allocation2 + $0x18] sm:$0xff] %vm19_vm1, %v473_v7  ;;  %24 = vst.msk [vmem:[#allocation2 + $0x20] sm:$0xff] %vm19_vm1, %v473_v7  ;;  %v464_v8 = vpack.c.bf16 %v71_v4, %v70_v2  ;;  %436 = vmatprep.mubr.msk.f32.mxu0 %vm72_vm0, %v36_v5  ;;  %v37_v9 = vld [vmem:[%s609_s0 + $0x8] sm:$0xff] }
   0x4   :  { %25 = vst.msk [vmem:[#allocation2 + $0x28] sm:$0xff] %vm19_vm1, %v473_v7  ;;  %26 = vst.msk [vmem:[#allocation2 + $0x30] sm:$0xff] %vm19_vm1, %v473_v7  ;;  %448 = vmatprep.mubr.msk.f32.mxu1 %vm72_vm0, %v44_v6  ;;  %461 = vmatprep.subr.bf16.mxu0 %v460_v3  ;;  %v45_v10 = vld [vmem:[%s609_s0 + $0x48] sm:$0xff]  ;;  %v38_v11 = vld [vmem:[%s609_s0 + $0x10] sm:$0xff] }
   0x5   :  { %27 = vst.msk [vmem:[#allocation2 + $0x38] sm:$0xff] %vm19_vm1, %v473_v7  ;;  %28 = vst.msk [vmem:[#allocation2 + $0x40] sm:$0xff] %vm19_vm1, %v473_v7  ;;  %468 = vmatprep.subr.bf16.mxu1 %v460_v3  ;;  %463 = vmatpush3.bf16.msra.mxu0 %v460_v3  ;;  %v46_v12 = vld [vmem:[%s609_s0 + $0x50] sm:$0xff]  ;;  %v39_v13 = vld [vmem:[%s609_s0 + $0x18] sm:$0xff] }
   0x6   :  { %29 = vst.msk [vmem:[#allocation2 + $0x48] sm:$0xff] %vm19_vm1, %v473_v7  ;;  %30 = vst.msk [vmem:[#allocation2 + $0x50] sm:$0xff] %vm19_vm1, %v473_v7  ;;  %470 = vmatpush3.bf16.msra.mxu1 %v460_v3  ;;  %465 = vmatprep.subr.bf16.mxu0 %v464_v8  ;;  %v47_v14 = vld [vmem:[%s609_s0 + $0x58] sm:$0xff]  ;;  %v40_v15 = vld [vmem:[%s609_s0 + $0x20] sm:$0xff] }
   0x7   :  { %31 = vst.msk [vmem:[#allocation2 + $0x58] sm:$0xff] %vm19_vm1, %v473_v7  ;;  %32 = vst.msk [vmem:[#allocation2 + $0x60] sm:$0xff] %vm19_vm1, %v473_v7  ;;  %469 = vmatprep.subr.bf16.mxu1 %v464_v8  ;;  %v48_v16 = vld [vmem:[%s609_s0 + $0x60] sm:$0xff]  ;;  %v41_v17 = vld [vmem:[%s609_s0 + $0x28] sm:$0xff] }
   0x8   :  { %33 = vst.msk [vmem:[#allocation2 + $0x68] sm:$0xff] %vm19_vm1, %v473_v7  ;;  %34 = vst.msk [vmem:[#allocation2 + $0x70] sm:$0xff] %vm19_vm1, %v473_v7  ;;  %v49_v18 = vld [vmem:[%s609_s0 + $0x68] sm:$0xff]  ;;  %v42_v19 = vld [vmem:[%s609_s0 + $0x30] sm:$0xff] }
   0x9   :  { %35 = vst.msk [vmem:[#allocation2 + $0x78] sm:$0xff] %vm19_vm1, %v473_v7  ;;  %467 = vmatpush3.bf16.msra.mxu0 %v464_v8  ;;  %v50_v20 = vld [vmem:[%s609_s0 + $0x70] sm:$0xff]  ;;  %v43_v21 = vld [vmem:[%s609_s0 + $0x38] sm:$0xff]  ;;  %v53_v23 = vld [vmem:[#allocation2 + $0x8] sm:$0xff] }
   0xa   :  { %471 = vmatpush3.bf16.msra.mxu1 %v464_v8  ;;  %v51_v22 = vld [vmem:[%s609_s0 + $0x78] sm:$0xff]  ;;  %v52_v25 = vld [vmem:[#allocation2] sm:$0xff]  ;;  %v54_v37 = vld [vmem:[#allocation2 + $0x10] sm:$0xff] }
   0xb   :  { %v55_v35 = vld [vmem:[#allocation2 + $0x18] sm:$0xff]  ;;  %v57_v47 = vld [vmem:[#allocation2 + $0x28] sm:$0xff]  ;;  %v56_v49 = vld [vmem:[#allocation2 + $0x20] sm:$0xff] }
   0xc   :  { %437 = vmatmul.mubr.msk.f32.vlgmr.msra.gmra.mrb[0].mxu0 %vm72_vm0, %v37_v9  ;;  %v60_v26 = vld [vmem:[#allocation2 + $0x40] sm:$0xff]  ;;  %v59_v58 = vld [vmem:[#allocation2 + $0x38] sm:$0xff]  ;;  %v58_v62 = vld [vmem:[#allocation2 + $0x30] sm:$0xff] }
   0xd   :  { %449 = vmatmul.mubr.msk.f32.vlgmr.msra.gmra.mrb[0].mxu1 %vm72_vm0, %v45_v10  ;;  %439 = vmatprep.mubr.msk.f32.mxu0 %vm72_vm0, %v38_v11  ;;  %v61_v24 = vld [vmem:[#allocation2 + $0x48] sm:$0xff]  ;;  %v62_v38 = vld [vmem:[#allocation2 + $0x50] sm:$0xff] }
   0xe   :  { %451 = vmatprep.mubr.msk.f32.mxu1 %vm72_vm0, %v46_v12  ;;  %v63_v36 = vld [vmem:[#allocation2 + $0x58] sm:$0xff]  ;;  %v64_v50 = vld [vmem:[#allocation2 + $0x60] sm:$0xff] }
   0xf   :  { %v65_v48 = vld [vmem:[#allocation2 + $0x68] sm:$0xff]  ;;  %v66_v0 = vld [vmem:[#allocation2 + $0x70] sm:$0xff] }
  0x10   :  { %440 = vmatmul.mubr.msk.f32.gmra.mrb[2].mxu0 %vm72_vm0, %v39_v13  ;;  %v67_v59 = vld [vmem:[#allocation2 + $0x78] sm:$0xff] }
  0x11   :  { %452 = vmatmul.mubr.msk.f32.gmra.mrb[2].mxu1 %vm72_vm0, %v47_v14  ;;  %442 = vmatprep.mubr.msk.f32.mxu0 %vm72_vm0, %v40_v15 }
  0x12   :  { %454 = vmatprep.mubr.msk.f32.mxu1 %vm72_vm0, %v48_v16 }
  0x14   :  { %443 = vmatmul.mubr.msk.f32.gmra.mrb[4].mxu0 %vm72_vm0, %v41_v17 }
  0x15   :  { %455 = vmatmul.mubr.msk.f32.gmra.mrb[4].mxu1 %vm72_vm0, %v49_v18  ;;  %445 = vmatprep.mubr.msk.f32.mxu0 %vm72_vm0, %v42_v19 }
  0x16   :  { %457 = vmatprep.mubr.msk.f32.mxu1 %vm72_vm0, %v50_v20 }
  0x18   :  { %446 = vmatmul.mubr.msk.f32.gmra.mrb[6].mxu0 %vm72_vm0, %v43_v21 }
  0x19   :  { %458 = vmatmul.mubr.msk.f32.gmra.mrb[6].mxu1 %vm72_vm0, %v51_v22 }
  0xdf   :  { %v438_v27 = vpop.f32.mrb[0].mxu0 }
  0xe0   :  { %v450_v28 = vpop.f32.mrb[0].mxu1  ;;  %v267_v29 = vadd.f32 %v438_v27, %v53_v23  ;;  %v187_v31 = vpop.f32.mrb[1].mxu0 }
  0xe1   :  { %v275_v30 = vadd.f32 %v450_v28, %v61_v24  ;;  %v227_v32 = vpop.f32.mrb[1].mxu1  ;;  %v266_v33 = vadd.f32 %v187_v31, %v52_v25 }
  0xe2   :  { %v274_v34 = vadd.f32 %v227_v32, %v60_v26  ;;  %284 = vst.msk [vmem:[#allocation2 + $0x8] sm:$0xff] %vm19_vm1, %v267_v29 }
  0xe3   :  { %292 = vst.msk [vmem:[#allocation2 + $0x48] sm:$0xff] %vm19_vm1, %v275_v30  ;;  %283 = vst.msk [vmem:[#allocation2] sm:$0xff] %vm19_vm1, %v266_v33  ;;  %v441_v39 = vpop.f32.mrb[2].mxu0 }
  0xe4   :  { %291 = vst.msk [vmem:[#allocation2 + $0x40] sm:$0xff] %vm19_vm1, %v274_v34  ;;  %v453_v40 = vpop.f32.mrb[2].mxu1  ;;  %v269_v41 = vadd.f32 %v441_v39, %v55_v35  ;;  %v197_v43 = vpop.f32.mrb[3].mxu0 }
  0xe5   :  { %v277_v42 = vadd.f32 %v453_v40, %v63_v36  ;;  %v237_v44 = vpop.f32.mrb[3].mxu1  ;;  %v268_v45 = vadd.f32 %v197_v43, %v54_v37 }
  0xe6   :  { %v276_v46 = vadd.f32 %v237_v44, %v62_v38  ;;  %286 = vst.msk [vmem:[#allocation2 + $0x18] sm:$0xff] %vm19_vm1, %v269_v41 }
  0xe7   :  { %294 = vst.msk [vmem:[#allocation2 + $0x58] sm:$0xff] %vm19_vm1, %v277_v42  ;;  %285 = vst.msk [vmem:[#allocation2 + $0x10] sm:$0xff] %vm19_vm1, %v268_v45  ;;  %v444_v52 = vpop.f32.mrb[4].mxu0 }
  0xe8   :  { %293 = vst.msk [vmem:[#allocation2 + $0x50] sm:$0xff] %vm19_vm1, %v276_v46  ;;  %v456_v53 = vpop.f32.mrb[4].mxu1  ;;  %v271_v54 = vadd.f32 %v444_v52, %v57_v47  ;;  %v207_v56 = vpop.f32.mrb[5].mxu0 }
  0xe9   :  { %v279_v55 = vadd.f32 %v456_v53, %v65_v48  ;;  %v247_v57 = vpop.f32.mrb[5].mxu1  ;;  %v270_v60 = vadd.f32 %v207_v56, %v56_v49 }
  0xea   :  { %v278_v61 = vadd.f32 %v247_v57, %v64_v50  ;;  %v302_v63 = vld [vmem:[#allocation2] sm:$0xff]  ;;  %288 = vst.msk [vmem:[#allocation2 + $0x28] sm:$0xff] %vm19_vm1, %v271_v54 }
  0xeb   :  { %296 = vst.msk [vmem:[#allocation2 + $0x68] sm:$0xff] %vm19_vm1, %v279_v55  ;;  %v320_v1 = vadd.f32 %v319_v51, %v302_v63  ;;  %287 = vst.msk [vmem:[#allocation2 + $0x20] sm:$0xff] %vm19_vm1, %v270_v60  ;;  %v447_v2 = vpop.f32.mrb[6].mxu0 }
  0xec   :  { %295 = vst.msk [vmem:[#allocation2 + $0x60] sm:$0xff] %vm19_vm1, %v278_v61  ;;  %v459_v3 = vpop.f32.mrb[6].mxu1  ;;  %v273_v4 = vadd.f32 %v447_v2, %v59_v58  ;;  %v217_v6 = vpop.f32.mrb[7].mxu0 }
  0xed   :  { %v281_v5 = vadd.f32 %v459_v3, %v67_v59  ;;  %v257_v7 = vpop.f32.mrb[7].mxu1  ;;  %336 = vst.msk [vmem:[#allocation4] sm:$0xff] %vm19_vm1, %v320_v1  ;;  %v272_v8 = vadd.f32 %v217_v6, %v58_v62 }
  0xee   :  { %v280_v9 = vadd.f32 %v257_v7, %v66_v0  ;;  %290 = vst.msk [vmem:[#allocation2 + $0x38] sm:$0xff] %vm19_vm1, %v273_v4 }
  0xef   :  { %298 = vst.msk [vmem:[#allocation2 + $0x78] sm:$0xff] %vm19_vm1, %v281_v5  ;;  %289 = vst.msk [vmem:[#allocation2 + $0x30] sm:$0xff] %vm19_vm1, %v272_v8 }
  0xf0   :  { %297 = vst.msk [vmem:[#allocation2 + $0x70] sm:$0xff] %vm19_vm1, %v280_v9 }
  0xf4   :  { %v381_v10 = vld [vmem:[#allocation4] sm:$0xff] }
  0xf5   :  { %382 = vst [vmem:[%s612_s3] sm:$0xff] %v381_v10 }

</bundles_post_ra>
